<compile_context>
chip_gen: v7x
topology: tpu7x:2x2x1
jax: 0.10.0
libtpu: 0.0.40
codegen_flags: <defaults>
</compile_context>

<pallas_src>
import functools

import jax
import jax.numpy as jnp
from jax.experimental import pallas as pl
from jax.experimental.pallas import tpu as pltpu


def _hh_edge_mp_kernel(lin_ref, feat_ref, out_ref, acc_ref, norm_ref,
                       *, num_type, tile_rows, tile_k):
    # lin_ref:  (tile_rows, tile_k)  flattened rows of linear_selected (MXU LHS)
    # feat_ref: (tile_k, F_pad)      feature slab for this K tile (MXU RHS)
    # out_ref:  (tile_rows, F_pad)
    # acc_ref:  (tile_rows, F_pad)   f32 accumulator (persists across k)
    # norm_ref: (tile_rows, 1)       f32 row-sum accumulator
    k = pl.program_id(1)

    @pl.when(k == 0)
    def _init():
        acc_ref[...] = jnp.zeros_like(acc_ref)
        norm_ref[...] = jnp.zeros_like(norm_ref)

    # Global (row, col) coordinates of this L tile.  Fold the "+ feature[i]"
    # self term into L by adding 1.0 at column i = row // num_type.
    r = (jax.lax.broadcasted_iota(jnp.int32, (tile_rows, tile_k), 0)
         + pl.program_id(0) * tile_rows)
    c = (jax.lax.broadcasted_iota(jnp.int32, (tile_rows, tile_k), 1)
         + k * tile_k)
    # Equivalent to (c == r // num_type) but uses only mul/cmp (VPU-friendly).
    self_mask = (r >= c * num_type) & (r < (c + 1) * num_type)

    # Single f32 copy of the L tile, reused by the MXU matmul and the XLU
    # row-sum (the RHS feature slab is f32, so the dot needs f32 LHS anyway).
    lf = lin_ref[...].astype(jnp.float32) + self_mask.astype(jnp.float32)

    acc_ref[...] += jnp.dot(lf, feat_ref[...],
                            preferred_element_type=jnp.float32)
    norm_ref[...] += jnp.sum(lf, axis=-1, keepdims=True)

    @pl.when(k == pl.num_programs(1) - 1)
    def _finalize():
        # Exact reciprocal (approx=True would break the 1e-5 tolerance) and a
        # broadcast multiply instead of a full (rows, F) divide.
        inv = pl.reciprocal(norm_ref[...], approx=False)
        out_ref[...] = (acc_ref[...] * inv).astype(out_ref.dtype)


def _pick_tile_rows(rows: int, target: int = 512, min_steps: int = 4) -> int:
    """Row tile: <= target, multiple of 16, aiming for >= min_steps grid steps."""
    cand = min(target, pl.cdiv(rows, min_steps))
    cand = (cand // 16) * 16
    if cand < 16 or cand >= rows:
        return rows
    return cand


def _pick_tile_k(n: int, target: int = 1024) -> int:
    """Contraction tile over the node axis: full N when it is small, else the
    largest multiple of 128 <= target that divides N (so boundary blocks never
    contain garbage columns)."""
    if n <= target:
        return n
    best = None
    for d in range(128, target + 1, 128):
        if n % d == 0:
            best = d
    return best if best is not None else n


def _vmem_cap_bytes() -> int:
    try:
        phys = pltpu.get_tpu_info().vmem_capacity_bytes
    except Exception:
        phys = 64 << 20  # conservative: v7x per-TensorCore VMEM
    return int(phys * 3 // 4)


def hh_edge_mp(feature, linear_selected, *, tile_rows=None, tile_k=None,
               lhs_dtype=jnp.bfloat16):
    """feature: (N, F); linear_selected: (N, T, 1, N) or (N, T, N).

    lhs_dtype: storage dtype for the flattened selection matrix (the dominant
      HBM stream).  bf16 is exact for 0/1 selection weights and halves its
      bandwidth; pass lhs_dtype=None to keep the input dtype for general
      real-valued linear_selected that needs full f32 precision.
    """
    N, F = feature.shape
    lin3 = linear_selected.reshape(N, -1, N)        # squeeze the unit matmul dim
    T = lin3.shape[1]
    rows = N * T

    lin2d = lin3.reshape(rows, N)                   # row i*T + t == L[i, t, :]
    if lhs_dtype is not None and lin2d.dtype != jnp.dtype(lhs_dtype):
        lin2d = lin2d.astype(lhs_dtype)

    # Lane-dense output: pad the feature dim up to a multiple of 128.
    F_pad = ((F + 127) // 128) * 128
    feat = feature if F_pad == F else jnp.pad(feature, ((0, 0), (0, F_pad - F)))

    if tile_rows is None:
        tile_rows = _pick_tile_rows(rows)
    if tile_k is None:
        tile_k = _pick_tile_k(N)
    assert tile_rows == rows or tile_rows % 8 == 0
    assert tile_k == N or (tile_k % 128 == 0 and N % tile_k == 0)

    num_row_tiles = pl.cdiv(rows, tile_rows)        # ragged last block is OK
    num_k = N // tile_k
    grid = (num_row_tiles, num_k)

    kernel = functools.partial(_hh_edge_mp_kernel, num_type=T,
                               tile_rows=tile_rows, tile_k=tile_k)

    lin_item = lin2d.dtype.itemsize
    feat_item = feat.dtype.itemsize
    out_item = jnp.dtype(feature.dtype).itemsize
    vmem_need = (
        2 * tile_rows * tile_k * lin_item            # L tiles (double-buffered)
        + 2 * tile_k * F_pad * feat_item             # feature tiles
        + 2 * tile_rows * F_pad * out_item           # output tiles
        + tile_rows * F_pad * 4                      # f32 accumulator scratch
        + tile_rows * 128 * 4                        # norm scratch (lane-padded)
    )
    vmem_limit = int(min(max(vmem_need + (8 << 20), 32 << 20), _vmem_cap_bytes()))

    cost = pl.CostEstimate(
        flops=2 * rows * N * F_pad,
        transcendentals=0,
        bytes_accessed=(rows * N * lin_item
                        + N * F_pad * feat_item
                        + rows * F_pad * out_item),
    )

    out2d = pl.pallas_call(
        kernel,
        out_shape=jax.ShapeDtypeStruct((rows, F_pad), feature.dtype),
        grid_spec=pltpu.PrefetchScalarGridSpec(
            num_scalar_prefetch=0,
            grid=grid,
            in_specs=[
                pl.BlockSpec((tile_rows, tile_k), lambda i, k: (i, k)),  # L
                pl.BlockSpec((tile_k, F_pad), lambda i, k: (k, 0)),      # feature
            ],
            out_specs=pl.BlockSpec((tile_rows, F_pad), lambda i, k: (i, 0)),
            scratch_shapes=[
                pltpu.VMEM((tile_rows, F_pad), jnp.float32),
                pltpu.VMEM((tile_rows, 1), jnp.float32),
            ],
        ),
        compiler_params=pltpu.CompilerParams(
            dimension_semantics=("parallel", "arbitrary"),
            vmem_limit_bytes=vmem_limit,
        ),
        cost_estimate=cost,
    )(lin2d, feat)

    out2d = out2d[:, :F] if F_pad != F else out2d
    return out2d.reshape(N, T, F)


def _reference(feature, linear_selected):
    N, F = feature.shape
    L = linear_selected.reshape(N, -1, N)
    T = L.shape[1]
    ef = jnp.einsum("itj,jf->itf", L, feature) + feature[:, None, :]
    norm = jnp.sum(L, axis=-1) + jnp.ones((N, T), feature.dtype)
    return ef / norm[:, :, None]


if __name__ == "__main__":
    # Small but MXU/lane-friendly demo shapes: N*T = 256 flattened rows,
    # F = 128 so output stores are lane-dense; auto tiling gives a 4-step
    # "parallel" row grid (exercises pipelining / both TCs on v7x).
    num_node, num_type, num_fea = 64, 4, 128

    key = jax.random.PRNGKey(0)
    k_feat, k_lin = jax.random.split(key)

    feature = jax.random.normal(k_feat, (num_node, num_fea), dtype=jnp.float32)
    # Selection-style (0/1) weights, matching the PyTorch (N, T, 1, N) shape.
    # 0/1 values are exact in the default bf16 LHS storage.
    linear_selected = jax.random.bernoulli(
        k_lin, p=0.5, shape=(num_node, num_type, 1, num_node)
    ).astype(jnp.float32)

    out = hh_edge_mp(feature, linear_selected)
    out = jax.block_until_ready(out)

    ref = _reference(feature, linear_selected)
    assert out.shape == (num_node, num_type, num_fea)
    assert jnp.allclose(out, ref, rtol=1e-5, atol=1e-5), "mismatch vs reference"

    print("KERNEL_OK")
</pallas_src>

<mosaic_0001>
module attributes {stable_mosaic.version = 11 : i64} {
  func.func @_hh_edge_mp_kernel(%arg0: i32, %arg1: i32, %arg2: memref<64x64xbf16, #tpu.memory_space<vmem>>, %arg3: memref<64x128xf32, #tpu.memory_space<vmem>>, %arg4: memref<64x128xf32, #tpu.memory_space<vmem>>, %arg5: memref<64x128xf32, #tpu.memory_space<vmem>>, %arg6: memref<64x1xf32, #tpu.memory_space<vmem>>) attributes {dimension_semantics = [#tpu.dimension_semantics<parallel>, #tpu.dimension_semantics<arbitrary>], iteration_bounds = array<i64: 4, 1>, scalar_prefetch = 0 : i64, scratch_operands = 2 : i64, tpu.core_type = #tpu.core_type<tc>, window_params = [{transform_indices = @transform_0, window_bounds = array<i64: 64, 64>}, {transform_indices = @transform_1, window_bounds = array<i64: 64, 128>}, {transform_indices = @transform_2, window_bounds = array<i64: 64, 128>}]} {
    %c0_i32 = arith.constant 0 : i32
    %0 = arith.cmpi eq, %arg1, %c0_i32 : i32
    %1 = arith.extui %0 : i1 to i32
    %c0_i32_0 = arith.constant 0 : i32
    %2 = arith.cmpi ne, %1, %c0_i32_0 : i32
    scf.if %2 {
      %cst_17 = arith.constant 0.000000e+00 : f32
      %38 = vector.broadcast %cst_17 : f32 to vector<64x128xf32>
      %c0_18 = arith.constant 0 : index
      %c0_19 = arith.constant 0 : index
      %39 = vector.load %arg5[%c0_18, %c0_19] : memref<64x128xf32, #tpu.memory_space<vmem>>, vector<64x128xf32>
      tpu.vector_store %arg5[%c0_18, %c0_19], %38 {strides = array<i32>} : memref<64x128xf32, #tpu.memory_space<vmem>>, vector<64x128xf32>,
      %cst_20 = arith.constant 0.000000e+00 : f32
      %40 = vector.broadcast %cst_20 : f32 to vector<64x1xf32>
      %c0_21 = arith.constant 0 : index
      %c0_22 = arith.constant 0 : index
      %41 = vector.load %arg6[%c0_21, %c0_22] : memref<64x1xf32, #tpu.memory_space<vmem>>, vector<64x1xf32>
      tpu.vector_store %arg6[%c0_21, %c0_22], %40 {strides = array<i32>} : memref<64x1xf32, #tpu.memory_space<vmem>>, vector<64x1xf32>,
    } else {
    }
    %3 = tpu.iota {dimensions = array<i32: 0>} : vector<64x64xi32>
    %c64_i32 = arith.constant 64 : i32
    %4 = arith.muli %arg0, %c64_i32 : i32
    %5 = vector.broadcast %4 : i32 to vector<64x64xi32>
    %6 = arith.addi %3, %5 : vector<64x64xi32>
    %7 = tpu.iota {dimensions = array<i32: 1>} : vector<64x64xi32>
    %c64_i32_1 = arith.constant 64 : i32
    %8 = arith.muli %arg1, %c64_i32_1 : i32
    %9 = vector.broadcast %8 : i32 to vector<64x64xi32>
    %10 = arith.addi %7, %9 : vector<64x64xi32>
    %c4_i32 = arith.constant 4 : i32
    %11 = vector.broadcast %c4_i32 : i32 to vector<64x64xi32>
    %12 = arith.muli %10, %11 : vector<64x64xi32>
    %13 = arith.cmpi sge, %6, %12 : vector<64x64xi32>
    %c1_i32 = arith.constant 1 : i32
    %14 = vector.broadcast %c1_i32 : i32 to vector<64x64xi32>
    %15 = arith.addi %10, %14 : vector<64x64xi32>
    %c4_i32_2 = arith.constant 4 : i32
    %16 = vector.broadcast %c4_i32_2 : i32 to vector<64x64xi32>
    %17 = arith.muli %15, %16 : vector<64x64xi32>
    %18 = arith.cmpi slt, %6, %17 : vector<64x64xi32>
    %19 = arith.andi %13, %18 : vector<64x64xi1>
    %c0 = arith.constant 0 : index
    %c0_3 = arith.constant 0 : index
    %20 = vector.load %arg2[%c0, %c0_3] : memref<64x64xbf16, #tpu.memory_space<vmem>>, vector<64x64xbf16>
    %21 = arith.extf %20 : vector<64x64xbf16> to vector<64x64xf32>
    %22 = arith.extui %19 : vector<64x64xi1> to vector<64x64xi32>
    %23 = arith.sitofp %22 : vector<64x64xi32> to vector<64x64xf32>
    %24 = arith.addf %21, %23 : vector<64x64xf32>
    %c0_4 = arith.constant 0 : index
    %c0_5 = arith.constant 0 : index
    %25 = vector.load %arg5[%c0_4, %c0_5] : memref<64x128xf32, #tpu.memory_space<vmem>>, vector<64x128xf32>
    %c0_6 = arith.constant 0 : index
    %c0_7 = arith.constant 0 : index
    %26 = vector.load %arg3[%c0_6, %c0_7] : memref<64x128xf32, #tpu.memory_space<vmem>>, vector<64x128xf32>
    %cst = arith.constant dense<0.000000e+00> : vector<64x128xf32>
    %27 = tpu.matmul %24, %26, %cst {dimension_numbers = #tpu.dot_dimension_numbers<[1], [0], [0], [1], [0, 0, 1, 1], [], []>} : vector<64x64xf32>, vector<64x128xf32>, vector<64x128xf32> -> vector<64x128xf32>
    %28 = arith.addf %25, %27 : vector<64x128xf32>
    %c0_8 = arith.constant 0 : index
    %c0_9 = arith.constant 0 : index
    %29 = vector.load %arg5[%c0_8, %c0_9] : memref<64x128xf32, #tpu.memory_space<vmem>>, vector<64x128xf32>
    tpu.vector_store %arg5[%c0_8, %c0_9], %28 {strides = array<i32>} : memref<64x128xf32, #tpu.memory_space<vmem>>, vector<64x128xf32>,
    %c0_10 = arith.constant 0 : index
    %c0_11 = arith.constant 0 : index
    %30 = vector.load %arg6[%c0_10, %c0_11] : memref<64x1xf32, #tpu.memory_space<vmem>>, vector<64x1xf32>
    %cst_12 = arith.constant dense<0.000000e+00> : vector<64xf32>
    %31 = vector.multi_reduction <add>, %24, %cst_12 [1] : vector<64x64xf32> to vector<64xf32>
    %32 = vector.shape_cast %31 : vector<64xf32> to vector<64x1xf32>
    %33 = arith.addf %30, %32 : vector<64x1xf32>
    %c0_13 = arith.constant 0 : index
    %c0_14 = arith.constant 0 : index
    %34 = vector.load %arg6[%c0_13, %c0_14] : memref<64x1xf32, #tpu.memory_space<vmem>>, vector<64x1xf32>
    tpu.vector_store %arg6[%c0_13, %c0_14], %33 {strides = array<i32>} : memref<64x1xf32, #tpu.memory_space<vmem>>, vector<64x1xf32>,
    %c0_i32_15 = arith.constant 0 : i32
    %35 = arith.cmpi eq, %arg1, %c0_i32_15 : i32
    %36 = arith.extui %35 : i1 to i32
    %c0_i32_16 = arith.constant 0 : i32
    %37 = arith.cmpi ne, %36, %c0_i32_16 : i32
    scf.if %37 {
      %c0_17 = arith.constant 0 : index
      %c0_18 = arith.constant 0 : index
      %38 = vector.load %arg6[%c0_17, %c0_18] : memref<64x1xf32, #tpu.memory_space<vmem>>, vector<64x1xf32>
      %39 = tpu.reciprocal %38 : vector<64x1xf32> -> vector<64x1xf32>
      %c0_19 = arith.constant 0 : index
      %c0_20 = arith.constant 0 : index
      %40 = vector.load %arg5[%c0_19, %c0_20] : memref<64x128xf32, #tpu.memory_space<vmem>>, vector<64x128xf32>
      %41 = vector.broadcast %39 : vector<64x1xf32> to vector<64x128xf32>
      %42 = arith.mulf %40, %41 : vector<64x128xf32>
      %c0_21 = arith.constant 0 : index
      %c0_22 = arith.constant 0 : index
      %43 = vector.load %arg4[%c0_21, %c0_22] : memref<64x128xf32, #tpu.memory_space<vmem>>, vector<64x128xf32>
      tpu.vector_store %arg4[%c0_21, %c0_22], %42 {strides = array<i32>} : memref<64x128xf32, #tpu.memory_space<vmem>>, vector<64x128xf32>,
    } else {
    }
    return
  }
  func.func @transform_0(%arg0: i32, %arg1: i32) -> (i32, i32) {
    %c0_i32 = arith.constant 0 : i32
    return %arg0, %arg1 : i32, i32
  }
  func.func @transform_1(%arg0: i32, %arg1: i32) -> (i32, i32) {
    %c0_i32 = arith.constant 0 : i32
    %c0_i32_0 = arith.constant 0 : i32
    return %arg1, %c0_i32 : i32, i32
  }
  func.func @transform_2(%arg0: i32, %arg1: i32) -> (i32, i32) {
    %c0_i32 = arith.constant 0 : i32
    %c0_i32_0 = arith.constant 0 : i32
    return %arg0, %c0_i32 : i32, i32
  }
}

</mosaic_0001>

<bundles_post_ra>
// kernel: tpu_custom_call.1
= control target key start
LH: loop header
LB: loop body
LE: loop exit
PB: predicated region body
PF: predicated region fallthrough
CT: control target
= control target key end

     0   :  { %7 = vsyncpa [#allocation5], 0  ;;  %s1247_s0 = inlined_call_operand.vmem [shape: bf16[256,64], index: 0, kind: input, shape index: {}]   ;;  %s1248_s1 = inlined_call_operand.vmem [shape: f32[64,128], index: 1, kind: input, shape index: {}]   ;;  %s1249_s2 = inlined_call_operand.hbm [shape: f32[256,128], index: 2, kind: output, shape index: {}]  }
   0x1   :  { %9 = vsyncpa [#allocation5 + $0x1], 0  ;;  %s994_s9 = smov 0   ;;  %s996_s10 = smov 0  }
   0x2   :  { %s998_s11 = smov 0   ;;  %s1000_s12 = smov 0  }
   0x3   :  { %s1002_s13 = smov 0   ;;  %s1004_s14 = smov 0  }
   0x4 LB: > { %s698_s15 = sadd.s32 4294967295, %s972_s14   ;;  %s699_s16 = sadd.s32 4294967294, %s972_s14   ;;  %s972_s14 = sphi %s1004_s14, %s15_s14   ;;  %s968_s13 = sphi %s1002_s13, %s1257_s13   ;;  %s964_s12 = sphi %s1000_s12, %s1256_s12   ;;  %s960_s11 = sphi %s998_s11, %s1255_s11   ;;  %s956_s10 = sphi %s996_s10, %s1254_s10   ;;  %s952_s9 = sphi %s994_s9, %s1253_s9  }
   0x5   : > { %s27_s17 = sadd.s32 1, %s968_s13  ;;  %s88_s18 = sadd.s32 1, %s960_s11 }
   0x6   : > { %p29_p0 = scmp.ge.s32.totalorder %s27_s17, 4  ;;  %p98_p1 = scmp.ne.s32.totalorder %s960_s11, %s956_s10 }
   0x7   : > { %p99_p2 = scmp.eq.s32.totalorder %s698_s15, 3  ;;  %p104_p3 = scmp.ne.s32.totalorder %s956_s10, %s952_s9 }
   0x8   : > { %s1259_s17 = smov (%p29_p0, %s27_s17), 0  ;;  %p105_p5 = scmp.eq.s32.totalorder %s699_s16, 3 }
   0x9   : > { %p1034_p4 = por %p99_p2, %p98_p1  ;;  %s85_s20 = ssub.s32 %s968_s13, %s1259_s17 }
   0xa   : > { %p703_p6 = scmp.ge.s32.totalorder %s972_s14, 1  ;;  %p86_p7 = scmp.eq.s32.totalorder %s85_s20, 0 }
   0xb   : > { %p1041_p8 = por %p105_p5, %p104_p3  ;;  %p144_p9 = scmp.lt.s32.totalorder %s972_s14, 5 }
   0xc   : > { %s1047_s22 = scalar_select %p86_p7, %s960_s11, %s88_s18  }
   0xd   : > { %p145_p10 = pnand %p703_p6, %p144_p9 }
   0xe   : > { %s705_s23 = sshll.u32 (!%p145_p10), %s964_s12, 3  ;;  %v211_v0 = vlaneseq (!%p145_p10)  ;;  %s707_s24 = sshll.u32 (!%p145_p10), %s964_s12, 6  ;;  %v310_v1 = vld [vmem:[%s1248_s1] sm:$0xff] (!%p145_p10)  ;;  %v311_v2 = vld [vmem:[%s1248_s1 + $0x8] sm:$0xff] (!%p145_p10)  ;;  %v312_v5 = vld [vmem:[%s1248_s1 + $0x10] sm:$0xff] (!%p145_p10)  ;;  %vm202_vm0 = vcmask (!%p145_p10), 7168  }
   0xf   : > { %148 = sbr.rel (%p145_p10) target bundleno = 367 (0x16f), region = 28  ;;  %p1057_p11 = scmp.lt.s32.totalorder (!%p145_p10), %s705_s23, 31  ;;  %v1061_v3 = vstv (!%p145_p10), %s707_s24  ;;  %v793_v4 = vpack.c.bf16 (!%p145_p10), %v311_v2, %v310_v1  ;;  %v313_v6 = vld [vmem:[%s1248_s1 + $0x18] sm:$0xff] (!%p145_p10)  ;;  %v314_v7 = vld [vmem:[%s1248_s1 + $0x20] sm:$0xff] (!%p145_p10)  ;;  %v315_v11 = vld [vmem:[%s1248_s1 + $0x28] sm:$0xff] (!%p145_p10)  ;;  %v974_v14 = vmov (!%p145_p10), 0.0  }
  0x10   : > { %v1072_v8 = vshrl.u32 (!%p145_p10), %v211_v0, 7  ;;  %v231_v9 = vand.u32 (!%p145_p10), 127, %v211_v0  ;;  %v797_v10 = vpack.c.bf16 (!%p145_p10), %v313_v6, %v312_v5  ;;  %v316_v12 = vld [vmem:[%s1248_s1 + $0x30] sm:$0xff] (!%p145_p10)  ;;  %v317_v13 = vld [vmem:[%s1248_s1 + $0x38] sm:$0xff] (!%p145_p10)  ;;  %203 = vst.msk [vmem:[#allocation3] sm:$0xff] (!%p145_p10), %vm202_vm0, %v974_v14  ;;  %204 = vst.msk [vmem:[#allocation3 + $0x8] sm:$0xff] (!%p145_p10), %vm202_vm0, %v974_v14  ;;  %v801_v15 = vpack.c.bf16 (!%p145_p10), %v315_v11, %v314_v7 }
  0x11   : > { %205 = vst.msk [vmem:[#allocation3 + $0x10] sm:$0xff] (!%p145_p10), %vm202_vm0, %v974_v14  ;;  %206 = vst.msk [vmem:[#allocation3 + $0x18] sm:$0xff] (!%p145_p10), %vm202_vm0, %v974_v14  ;;  %vm318_vm1 = vcmask (!%p145_p10), 523264   ;;  %794 = vmatprep.subr.bf16.mxu0 (!%p145_p10), %v793_v4  ;;  %v1101_v16 = vpack.c.bf16 (!%p145_p10), %v317_v13, %v316_v12  ;;  %809 = vmatprep.subr.bf16.mxu1 (!%p145_p10), %v793_v4  ;;  %v975_v7 = vmov (!%p145_p10), 0   ;;  %s729_s3 = sshll.u32 (!%p145_p10), %s964_s12, 10  ;;  %s976_s12 = smov (!%p145_p10), [#allocation4]  }
  0x12   : > { %207 = vst.msk [vmem:[#allocation3 + $0x20] sm:$0xff] (!%p145_p10), %vm202_vm0, %v974_v14  ;;  %208 = vst.msk [vmem:[#allocation3 + $0x28] sm:$0xff] (!%p145_p10), %vm202_vm0, %v974_v14  ;;  %v222_v17 = vadd.s32 (!%p145_p10), %v1061_v3, %v1072_v8  ;;  %v1105_v18 = vmul.u32 (!%p145_p10), 4, %v231_v9  ;;  %v244_v19 = vadd.s32 (!%p145_p10), 1, %v231_v9  ;;  %v213_v20 = vadd.s32 (!%p145_p10), 8, %v1072_v8  ;;  %796 = vmatpush3.bf16.msra.mxu0 (!%p145_p10), %v793_v4  ;;  %813 = vmatpush3.bf16.msra.mxu1 (!%p145_p10), %v793_v4  ;;  %s1195_s7 = scalar_lea.hbm (!%p145_p10), %s1249_s2, %s729_s3  ;;  %s898_s16 = sshll.u32 (!%p145_p10), %s976_s12, 4  ;;  %s899_s16 = int_to_ptr.vmem [resolvable:$false] %s898_s16 }
  0x13   : > { %209 = vst.msk [vmem:[#allocation3 + $0x30] sm:$0xff] (!%p145_p10), %vm202_vm0, %v974_v14  ;;  %210 = vst.msk [vmem:[#allocation3 + $0x38] sm:$0xff] (!%p145_p10), %vm202_vm0, %v974_v14  ;;  %v214_v21 = vadd.s32 (!%p145_p10), 16, %v1072_v8  ;;  %v215_v22 = vadd.s32 (!%p145_p10), 24, %v1072_v8  ;;  %v216_v23 = vadd.s32 (!%p145_p10), 32, %v1072_v8  ;;  %v217_v24 = vadd.s32 (!%p145_p10), 40, %v1072_v8  ;;  %798 = vmatprep.subr.bf16.mxu0 (!%p145_p10), %v797_v10  ;;  %810 = vmatprep.subr.bf16.mxu1 (!%p145_p10), %v797_v10 }
  0x14   : > { %vm236_vm2 = vcmp.ge.s32.totalorder (!%p145_p10), %v222_v17, %v1105_v18  ;;  %v1118_v25 = vmul.u32 (!%p145_p10), 4, %v244_v19  ;;  %v223_v26 = vadd.s32 (!%p145_p10), %v1061_v3, %v213_v20  ;;  %v218_v27 = vadd.s32 (!%p145_p10), 48, %v1072_v8  ;;  %876 = vset.pattern.permute.xlu0 (!%p145_p10), %v975_v7  ;;  %877 = vset.pattern.permute.xlu1 (!%p145_p10), %v975_v7  ;;  %s900_s18 = scalar_lea.vmem (!%p145_p10), %s899_s16, 2048 }
  0x15   : > { %v224_v29 = vadd.s32 (!%p145_p10), %v1061_v3, %v214_v21  ;;  %v225_v31 = vadd.s32 (!%p145_p10), %v1061_v3, %v215_v22  ;;  %v226_v32 = vadd.s32 (!%p145_p10), %v1061_v3, %v216_v23  ;;  %v227_v33 = vadd.s32 (!%p145_p10), %v1061_v3, %v217_v24 }
  0x16   : > { %s1261_s23 = smov (!%p1057_p11, %s705_s23), 31  ;;  %vm246_vm3 = vcmp.lt.s32.totalorder %v222_v17, %v1118_v25  ;;  %vm237_vm4 = vcmp.ge.s32.totalorder %v223_v26, %v1105_v18  ;;  %vm247_vm5 = vcmp.lt.s32.totalorder %v223_v26, %v1118_v25  ;;  %800 = vmatpush3.bf16.msra.mxu0 %v797_v10  ;;  %814 = vmatpush3.bf16.msra.mxu1 %v797_v10  ;;  %v219_v58 = vadd.s32 56, %v1072_v8 }
  0x17   : > { %s706_s25 = sshll.u32 %s1261_s23, 2  ;;  %vm254_vm6 = vmand %vm236_vm2, %vm246_vm3  ;;  %vm238_vm7 = vcmp.ge.s32.totalorder %v224_v29, %v1105_v18  ;;  %vm248_vm8 = vcmp.lt.s32.totalorder %v224_v29, %v1118_v25  ;;  %802 = vmatprep.subr.bf16.mxu0 %v801_v15  ;;  %811 = vmatprep.subr.bf16.mxu1 %v801_v15  ;;  %vm239_vm10 = vcmp.ge.s32.totalorder %v225_v31, %v1105_v18  ;;  %v464_v8 = vld [vmem:[#allocation3] sm:$0xff]  ;;  %v465_v12 = vld [vmem:[#allocation3 + $0x8] sm:$0xff]  ;;  %s171_s23 = sand.u32 1, %s956_s10  }
  0x18   : > { %s1115_s28 = scalar_lea.vmem %s1247_s0, %s706_s25  ;;  %v708_v38 = vsel %vm254_vm6, 1.0, %v974_v14  ;;  %vm255_vm9 = vmand %vm237_vm4, %vm247_vm5  ;;  %vm249_vm11 = vcmp.lt.s32.totalorder %v225_v31, %v1118_v25  ;;  %vm240_vm13 = vcmp.ge.s32.totalorder %v226_v32, %v1105_v18  ;;  %vm250_vm14 = vcmp.lt.s32.totalorder %v226_v32, %v1118_v25  ;;  %v466_v10 = vld [vmem:[#allocation3 + $0x10] sm:$0xff]  ;;  %s704_s29 = sshll.u32 %s171_s23, 6 }
  0x19   : > { %v731_v28 = vld [vmem:[%s1115_s28] sm:$0xff]   ;;  %v746_v30 = vld [vmem:[%s1115_s28 + $0x8] sm:$0xff]   ;;  %v747_v37 = vld [vmem:[%s1115_s28 + $0x10] sm:$0xff]   ;;  %v709_v41 = vsel %vm255_vm9, 1.0, %v974_v14  ;;  %vm241_vm2 = vcmp.ge.s32.totalorder %v227_v33, %v1105_v18  ;;  %vm251_vm4 = vcmp.lt.s32.totalorder %v227_v33, %v1118_v25  ;;  %v228_v56 = vadd.s32 %v1061_v3, %v218_v27  ;;  %s173_s30 = scalar_lea.vmem [#allocation4], %s704_s29  ;;  %s1201_s8 = scalar_lea.sflag [#allocation5], %s171_s23 }
  0x1a   : > { %v732_v34 = vunpack.c.l.bf16 %v731_v28  ;;  %v733_v35 = vunpack.c.h.bf16 %v731_v28  ;;  %v736_v36 = vunpack.c.l.bf16 %v746_v30  ;;  %v737_v39 = vunpack.c.h.bf16 %v746_v30  ;;  %vm256_vm12 = vmand %vm238_vm7, %vm248_vm8  ;;  %804 = vmatpush3.bf16.msra.mxu0 %v801_v15  ;;  %815 = vmatpush3.bf16.msra.mxu1 %v801_v15  ;;  %v748_v48 = vld [vmem:[%s1115_s28 + $0x18] sm:$0xff]   ;;  %v468_v19 = vld [vmem:[#allocation3 + $0x20] sm:$0xff]  ;;  %s610_s4 = sshll.u32 %s173_s30, 4  ;;  %s1197_s4 = int_to_ptr.vmem [resolvable:$true] %s610_s4 }
  0x1b   : > { %v710_v43 = vsel %vm256_vm12, 1.0, %v974_v14  ;;  %vm257_vm15 = vmand %vm239_vm10, %vm249_vm11  ;;  %v740_v44 = vunpack.c.l.bf16 %v747_v37  ;;  %806 = vmatprep.subr.bf16.mxu0 %v1101_v16  ;;  %v741_v52 = vunpack.c.h.bf16 %v747_v37  ;;  %812 = vmatprep.subr.bf16.mxu1 %v1101_v16  ;;  %v744_v57 = vunpack.c.l.bf16 %v748_v48  ;;  %v469_v22 = vld [vmem:[#allocation3 + $0x28] sm:$0xff]  ;;  %v470_v26 = vld [vmem:[#allocation3 + $0x30] sm:$0xff]  ;;  %s894_s15 = scalar_lea.vmem %s1197_s4, 1024  ;;  %p901_p1 = scmp.lt.s32.totalorder %s1197_s4, %s899_s16 }
  0x1c   : > { %v294_v40 = vadd.f32 %v732_v34, %v708_v38  ;;  %v295_v42 = vadd.f32 %v733_v35, %v709_v41  ;;  %v296_v46 = vadd.f32 %v736_v36, %v710_v43  ;;  %v711_v47 = vsel %vm257_vm15, 1.0, %v974_v14  ;;  %vm258_vm3 = vmand %vm240_vm13, %vm250_vm14  ;;  %v471_v29 = vld [vmem:[#allocation3 + $0x38] sm:$0xff]  ;;  %p895_p12 = scmp.ne.s32.totalorder %s1197_s4, %s894_s15  ;;  %p902_p2 = scmp.lt.s32.totalorder %s900_s18, %s894_s15 }
  0x1d   : > { %v297_v50 = vadd.f32 %v737_v39, %v711_v47  ;;  %v712_v51 = vsel %vm258_vm3, 1.0, %v974_v14  ;;  %vm259_vm5 = vmand %vm241_vm2, %vm251_vm4  ;;  %vm242_vm6 = vcmp.ge.s32.totalorder %v228_v56, %v1105_v18  ;;  %vm252_vm7 = vcmp.lt.s32.totalorder %v228_v56, %v1118_v25 }
  0x1e   : > { %v472_v45 = vsel %vm318_vm1, %v294_v40, 0.0  ;;  %781 = vmatprep.mubr.msk.f32.mxu0 %vm318_vm1, %v294_v40  ;;  %v475_v49 = vsel %vm318_vm1, %v295_v42, 0.0  ;;  %v478_v53 = vsel %vm318_vm1, %v296_v46, 0.0  ;;  %v298_v54 = vadd.f32 %v740_v44, %v712_v51  ;;  %808 = vmatpush3.bf16.msra.mxu0 %v1101_v16  ;;  %vm260_vm8 = vmand %vm242_vm6, %vm252_vm7  ;;  %p896_p13 = pnand %p895_p12, %p1034_p4  ;;  %p903_p3 = por %p902_p2, %p901_p1 }
  0x1f   : > { %473 = vadd.xlane.f32.xlu0 %v472_v45  ;;  %v713_v55 = vsel %vm259_vm5, 1.0, %v974_v14  ;;  %479 = vadd.xlane.f32.xlu1 %v478_v53  ;;  %v481_v59 = vsel %vm318_vm1, %v297_v50, 0.0  ;;  %v229_v61 = vadd.s32 %v1061_v3, %v219_v58  ;;  %v714_v63 = vsel %vm260_vm8, 1.0, %v974_v14 }
  0x20   : > { %v299_v60 = vadd.f32 %v741_v52, %v713_v55  ;;  %816 = vmatpush3.bf16.msra.mxu1 %v1101_v16  ;;  %787 = vmatprep.mubr.msk.f32.mxu1 %vm318_vm1, %v298_v54  ;;  %v484_v62 = vsel %vm318_vm1, %v298_v54, 0.0  ;;  %v745_v0 = vunpack.c.h.bf16 %v748_v48  ;;  %v300_v1 = vadd.f32 %v744_v57, %v714_v63  ;;  %v467_v16 = vld [vmem:[#allocation3 + $0x18] sm:$0xff]  ;;  %p897_p0 = pneg %p896_p13 }
  0x21   : > { %782 = vmatmul.mubr.msk.f32.vlgmr.msra.gmra.mrb[0].mxu0 %vm318_vm1, %v295_v42  ;;  %vm243_vm9 = vcmp.ge.s32.totalorder %v229_v61, %v1105_v18  ;;  %vm253_vm10 = vcmp.lt.s32.totalorder %v229_v61, %v1118_v25 }
  0x22   : > { %784 = vmatprep.mubr.msk.f32.mxu0 %vm318_vm1, %v296_v46  ;;  %v487_v2 = vsel %vm318_vm1, %v299_v60, 0.0  ;;  %vm261_vm11 = vmand %vm243_vm9, %vm253_vm10  ;;  %v490_v4 = vsel %vm318_vm1, %v300_v1, 0.0  ;;  %p904_p5 = pnand %p903_p3, %p897_p0 }
  0x23   : > { %476 = vadd.xlane.f32.xlu0 %v475_v49  ;;  %482 = vadd.xlane.f32.xlu1 %v481_v59  ;;  %v715_v3 = vsel %vm261_vm11, 1.0, %v974_v14 }
  0x24   : > { %788 = vmatmul.mubr.msk.f32.vlgmr.msra.gmra.mrb[0].mxu1 %vm318_vm1, %v299_v60  ;;  %v301_v5 = vadd.f32 %v745_v0, %v715_v3 }
  0x25   : > { %790 = vmatprep.mubr.msk.f32.mxu1 %vm318_vm1, %v300_v1  ;;  %785 = vmatmul.mubr.msk.f32.gmra.mrb[2].mxu0 %vm318_vm1, %v297_v50 }
  0x26   : > { %v493_v6 = vsel %vm318_vm1, %v301_v5, 0.0 }
  0x27   : > { %485 = vadd.xlane.f32.xlu0 %v484_v62  ;;  %488 = vadd.xlane.f32.xlu1 %v487_v2 }
  0x28   : > { %791 = vmatmul.mubr.msk.f32.gmra.mrb[2].mxu1 %vm318_vm1, %v301_v5 }
  0x2b   : > { %491 = vadd.xlane.f32.xlu0 %v490_v4  ;;  %494 = vadd.xlane.f32.xlu1 %v493_v6 }
  0xac   : > { %v474_v9 = vpop.xlane.xlu0 %473  ;;  %v480_v13 = vpop.xlane.xlu1 %479 }
  0xad   : > { %v496_v11 = vadd.f32 %v474_v9, %v464_v8  ;;  %v498_v14 = vadd.f32 %v480_v13, %v466_v10 }
  0xaf   : > { %505 = vst.msk [vmem:[#allocation3] sm:$0xff] %vm202_vm0, %v496_v11  ;;  %507 = vst.msk [vmem:[#allocation3 + $0x10] sm:$0xff] %vm202_vm0, %v498_v14 }
  0xb0   : > { %v477_v15 = vpop.xlane.xlu0 %476  ;;  %v483_v18 = vpop.xlane.xlu1 %482 }
  0xb1   : > { %v497_v17 = vadd.f32 %v477_v15, %v465_v12  ;;  %v499_v20 = vadd.f32 %v483_v18, %v467_v16 }
  0xb3   : > { %506 = vst.msk [vmem:[#allocation3 + $0x8] sm:$0xff] %vm202_vm0, %v497_v17  ;;  %508 = vst.msk [vmem:[#allocation3 + $0x18] sm:$0xff] %vm202_vm0, %v499_v20 }
  0xb4   : > { %v486_v21 = vpop.xlane.xlu0 %485  ;;  %v489_v24 = vpop.xlane.xlu1 %488 }
  0xb5   : > { %v500_v23 = vadd.f32 %v486_v21, %v468_v19  ;;  %v501_v27 = vadd.f32 %v489_v24, %v469_v22 }
  0xb6   : > { %v516_v25 = vld [vmem:[#allocation3] sm:$0xff]  ;;  %v518_v33 = vld [vmem:[#allocation3 + $0x10] sm:$0xff] }
  0xb7   : > { %509 = vst.msk [vmem:[#allocation3 + $0x20] sm:$0xff] %vm202_vm0, %v500_v23  ;;  %878 = vrcp.f32 %v516_v25  ;;  %510 = vst.msk [vmem:[#allocation3 + $0x28] sm:$0xff] %vm202_vm0, %v501_v27 }
  0xb8   : > { %v492_v28 = vpop.xlane.xlu0 %491  ;;  %v495_v32 = vpop.xlane.xlu1 %494 }
  0xb9   : > { %v502_v30 = vadd.f32 %v492_v28, %v470_v26  ;;  %v503_v34 = vadd.f32 %v495_v32, %v471_v29 }
  0xba   : > { %v517_v31 = vld [vmem:[#allocation3 + $0x8] sm:$0xff]  ;;  %v519_v35 = vld [vmem:[#allocation3 + $0x18] sm:$0xff] }
  0xbb   : > { %511 = vst.msk [vmem:[#allocation3 + $0x30] sm:$0xff] %vm202_vm0, %v502_v30  ;;  %880 = vrcp.f32 %v517_v31  ;;  %512 = vst.msk [vmem:[#allocation3 + $0x38] sm:$0xff] %vm202_vm0, %v503_v34 }
  0xbc   : > { %882 = vrcp.f32 %v518_v33 }
  0xbd   : > { %884 = vrcp.f32 %v519_v35 }
  0xbe   : > { %v520_v37 = vld [vmem:[#allocation3 + $0x20] sm:$0xff]  ;;  %v521_v39 = vld [vmem:[#allocation3 + $0x28] sm:$0xff] }
  0xbf   : > { %886 = vrcp.f32 %v520_v37 }
  0xc0   : > { %888 = vrcp.f32 %v521_v39 }
  0xc1   : > { %v879_v36 = vpop.eup %878 }
  0xc2   : > { %542 = vperm.xlu0 %876, %v879_v36   ;;  %v522_v41 = vld [vmem:[#allocation3 + $0x30] sm:$0xff]  ;;  %v523_v43 = vld [vmem:[#allocation3 + $0x38] sm:$0xff] }
  0xc3   : > { %890 = vrcp.f32 %v522_v41 }
  0xc4   : > { %892 = vrcp.f32 %v523_v43 }
  0xc5   : > { %v881_v38 = vpop.eup %880 }
  0xc6   : > { %547 = vperm.xlu1 %877, %v881_v38   ;;  %v883_v40 = vpop.eup %882 }
  0xc7   : > { %v885_v42 = vpop.eup %884 }
  0xc9   : > { %v887_v44 = vpop.eup %886 }
  0xca   : > { %552 = vperm.xlu1 %877, %v883_v40   ;;  %v889_v45 = vpop.eup %888 }
  0xcd   : > { %v891_v46 = vpop.eup %890 }
  0xce   : > { %557 = vperm.xlu1 %877, %v885_v42   ;;  %v893_v47 = vpop.eup %892 }
  0xd2   : > { %562 = vperm.xlu1 %877, %v887_v44  }
  0xd6   : > { %567 = vperm.xlu1 %877, %v889_v45  }
  0xda   : > { %572 = vperm.xlu1 %877, %v891_v46  }
  0xde   : > { %577 = vperm.xlu1 %877, %v893_v47  }
  0xf4   : > { %v783_v48 = vpop.f32.mrb[0].mxu0 }
  0xf5   : > { %v409_v49 = vpop.f32.mrb[1].mxu0 }
  0xf7   : > { %v789_v50 = vpop.f32.mrb[0].mxu1 }
  0xf8   : > { %v429_v51 = vpop.f32.mrb[1].mxu1  ;;  %v786_v52 = vpop.f32.mrb[2].mxu0 }
  0xf9   : > { %v419_v53 = vpop.f32.mrb[3].mxu0 }
  0xfb   : > { %v792_v54 = vpop.f32.mrb[2].mxu1 }
  0xfc   : > { %v439_v55 = vpop.f32.mrb[3].mxu1 }
 0x141   : > { %v543_v56 = vpop.permute.xlu0 %542 }
 0x142   : > { %v580_v57 = vmul.f32 %v543_v56, %v409_v49 }
 0x144   : > { %588 = vst [vmem:[%s173_s30] sm:$0xff] %v580_v57 }
 0x145   : > { %v548_v58 = vpop.permute.xlu1 %547 }
 0x146   : > { %v581_v59 = vmul.f32 %v783_v48, %v548_v58 }
 0x148   : > { %589 = vst [vmem:[%s173_s30 + $0x8] sm:$0xff] %v581_v59 }
 0x149   : > { %v553_v60 = vpop.permute.xlu1 %552 }
 0x14a   : > { %v582_v61 = vmul.f32 %v553_v60, %v419_v53 }
 0x14c   : > { %590 = vst [vmem:[%s173_s30 + $0x10] sm:$0xff] %v582_v61 }
 0x14d   : > { %v558_v62 = vpop.permute.xlu1 %557 }
 0x14e   : > { %v583_v63 = vmul.f32 %v786_v52, %v558_v62 }
 0x150   : > { %591 = vst [vmem:[%s173_s30 + $0x18] sm:$0xff] %v583_v63 }
 0x151   : > { %v563_v0 = vpop.permute.xlu1 %562 }
 0x152   : > { %v584_v1 = vmul.f32 %v563_v0, %v429_v51 }
 0x154   : > { %592 = vst [vmem:[%s173_s30 + $0x20] sm:$0xff] %v584_v1 }
 0x155   : > { %v568_v2 = vpop.permute.xlu1 %567 }
 0x156   : > { %v585_v3 = vmul.f32 %v789_v50, %v568_v2 }
 0x158   : > { %593 = vst [vmem:[%s173_s30 + $0x28] sm:$0xff] %v585_v3 }
 0x159   : > { %v573_v4 = vpop.permute.xlu1 %572 }
 0x15a   : > { %v586_v5 = vmul.f32 %v573_v4, %v439_v55 }
 0x15c   : > { %594 = vst [vmem:[%s173_s30 + $0x30] sm:$0xff] %v586_v5 }
 0x15d   : > { %v578_v6 = vpop.permute.xlu1 %577 }
 0x15e   : > { %v587_v7 = vmul.f32 %v792_v54, %v578_v6 }
 0x160   : > { %595 = vst [vmem:[%s173_s30 + $0x38] sm:$0xff] %v587_v7 }
 0x161   : > { %907 = shalt.err (!%p904_p5)
}
 0x162   : > { %s908_s20 = scalar_lea.hbm %s1195_s7, 1024  ;;  %s912_s26 = scalar_lea.hbm %s1249_s2, 4096 }
 0x163   : > { %p909_p6 = scmp.ne.s32.totalorder %s1195_s7, %s908_s20  ;;  %p913_p10 = scmp.lt.u32.totalorder %s1195_s7, %s1249_s2 }
 0x164   : > { %p914_p11 = scmp.lt.u32.totalorder %s912_s26, %s908_s20  ;;  %p916_p13 = scmp.lt.u32.totalorder %s908_s20, %s1195_s7 }
 0x165   : > { %p910_p7 = pnand %p909_p6, %p1034_p4 }
 0x166   : > { %p915_p12 = por %p914_p11, %p913_p10 }
 0x167   : > { %p911_p9 = pneg %p910_p7 }
 0x168   : > { %p917_p0 = por %p916_p13, %p915_p12 }
 0x16a   : > { %p918_p1 = pnand %p917_p0, %p911_p9 }
 0x16c   : > { %921 = shalt.err (!%p918_p1)
}
 0x16d   : > { %s977_s23 = smov 128   ;;  %s978_s29 = smov 8  }
 0x16e   : > { %817 = dma.vmem_to_hbm [thread:$0]  (%p1034_p4), %s1197_s4, 1024, %s1195_s7, %s1201_s8, %s977_s23, %s977_s23, %s978_s29  }
 0x16f PF: > { %p823_p2 = scmp.ge.s32.totalorder %s972_s14, 2  ;;  %s625_s30 = sand.u32 1, %s952_s9  }
 0x170   : > { %s626_s3 = scalar_lea.sflag [#allocation5], %s625_s30 }
 0x171   : > { %p820_p3 = pnand %p823_p2, %p1041_p8 }
 0x173   : > { %947 = dma.done.wait (!%p820_p3), %s626_s3, 1024  }
 0x174   : > { %949 = vsyncadd (!%p820_p3), %s626_s3, 4294966272  ;;  %s15_s14 = sadd.s32 1, %s972_s14   ;;  %s1253_s9 = smov %s956_s10 }
 0x175   : > { %p12_p5 = scmp.ge.s32.totalorder %s15_s14, 6   ;;  %s1254_s10 = smov %s960_s11 }
 0x176   : > { %s1255_s11 = smov %s1047_s22  ;;  %s1256_s12 = smov %s968_s13 }
 0x177   : > { %s1257_s13 = smov %s1259_s17  ;;  %14 = sbr.rel (!%p12_p5) target bundleno = 4 (0x4), region = 74 }
 0x17e   :  { %631 = vsyncpa [#allocation5], 1 }
 0x17f   :  { %633 = vsyncpa [#allocation5 + $0x1], 1 }

</bundles_post_ra>
